<compile_context>
chip_gen: v5e
topology: v5e:2x2
jax: 0.10.0
libtpu: 0.0.40
codegen_flags: <defaults>
</compile_context>

<pallas_src>
import functools

import jax
import jax.numpy as jnp
from jax.experimental import pallas as pl
from jax.experimental.pallas import tpu as pltpu

LANES = 128
SUBLANES = 8
# Per-input, per-pipeline-buffer HBM/VMEM byte budget.
MAX_TILE_BYTES = 2 * 1024 * 1024
# In-kernel compute sub-chunk (rows): bounds live f32 temporaries.
CHUNK_TARGET = 512


def _round_up(x, m):
    return ((x + m - 1) // m) * m


def _l1_sum_kernel(x1_ref, x2_ref, out_ref, acc_ref, *,
                   tile_rows, chunk_rows, total_rows, blocks_per_slice,
                   need_mask):
    """Accumulate sum(|x1 - x2|) for one slice of row-blocks.

    Grid is (num_slices [parallel], blocks_per_slice [arbitrary/reduction]).
    acc_ref is an (8, 128) per-lane f32 accumulator in VMEM.
    """
    s = pl.program_id(0)
    i = pl.program_id(1)  # reduction axis within this slice

    @pl.when(i == 0)
    def _():
        acc_ref[...] = jnp.zeros_like(acc_ref)

    n_chunks = tile_rows // chunk_rows
    block_idx = s * blocks_per_slice + i  # unclamped (index_map clamps the DMA)

    def _accumulate(masked):
        def body(c, acc):
            r0 = pl.multiple_of(c * chunk_rows, chunk_rows)
            x1c = x1_ref[pl.ds(r0, chunk_rows), :].astype(jnp.float32)
            x2c = x2_ref[pl.ds(r0, chunk_rows), :].astype(jnp.float32)
            d = jnp.abs(x1c - x2c)
            if masked:
                row_ids = (block_idx * tile_rows + c * chunk_rows
                           + jax.lax.broadcasted_iota(jnp.int32, d.shape, 0))
                d = jnp.where(row_ids < total_rows, d, jnp.float32(0.0))
            # Leading-axis reduce only -> pure VALU adds, no XLU in the hot
            # loop (chunk_rows is always a multiple of 8).
            return acc + d.reshape(chunk_rows // SUBLANES, SUBLANES,
                                   LANES).sum(axis=0)

        return jax.lax.fori_loop(
            0, n_chunks, body,
            jnp.zeros((SUBLANES, LANES), jnp.float32),
            unroll=True)

    if need_mask:
        block_end = (block_idx + 1) * tile_rows

        # Steady-state blocks: no masking work at all.
        @pl.when(block_end <= total_rows)
        def _():
            acc_ref[...] += _accumulate(False)

        # Only the final / overhang block pays for iota + cmp + select.
        @pl.when(block_end > total_rows)
        def _():
            acc_ref[...] += _accumulate(True)
    else:
        acc_ref[...] += _accumulate(False)

    @pl.when(i == pl.num_programs(1) - 1)
    def _():
        # Single cross-lane/sublane reduce per slice.
        out_ref[0, 0] = jnp.sum(acc_ref[...])


def color_loss(x1, x2):
    """L1 loss (mean of |x1 - x2|), matching torch.nn.L1Loss()."""
    assert x1.shape == x2.shape
    n_elem = x1.size
    if n_elem == 0:
        # torch.nn.L1Loss on empty inputs yields NaN.
        return jnp.float32(jnp.nan)

    x1f = x1.reshape(-1)
    x2f = x2.reshape(-1)

    # Handle the (rare) non-lane-aligned tail in plain JAX instead of padding
    # (a full jnp.pad would read+write both tensors once before the kernel,
    # roughly doubling HBM traffic for this memory-bound op).
    rem = n_elem % LANES
    main = n_elem - rem
    tail_sum = jnp.float32(0.0)
    if rem:
        tail_sum = jnp.sum(jnp.abs(x1f[main:].astype(jnp.float32)
                                   - x2f[main:].astype(jnp.float32)))
        if main == 0:
            return (tail_sum / jnp.float32(n_elem)).astype(jnp.float32)
        x1f = x1f[:main]
        x2f = x2f[:main]

    rows = main // LANES
    x1m = x1f.reshape(rows, LANES)
    x2m = x2f.reshape(rows, LANES)

    itemsize = jnp.dtype(x1m.dtype).itemsize
    # Sublane packing: 8 for 32-bit, 16 for bf16/f16, 32 for 8-bit dtypes.
    sub = max(SUBLANES, 32 // itemsize)

    # Dtype-aware block size: a fixed byte budget per input per buffer.
    budget_rows = MAX_TILE_BYTES // (LANES * itemsize)   # multiple of 512
    if rows >= budget_rows:
        tile_rows = budget_rows
        chunk_rows = CHUNK_TARGET
    else:
        tile_rows = _round_up(rows, sub)
        if tile_rows > CHUNK_TARGET:
            tile_rows = _round_up(tile_rows, CHUNK_TARGET)
            chunk_rows = CHUNK_TARGET
        else:
            chunk_rows = tile_rows

    total_blocks = pl.cdiv(rows, tile_rows)

    # Split across two TensorCores (v7x) only when there is plenty of work;
    # on single-TC v5e/v6e the extra slice costs at most one clamped block.
    num_slices = 2 if total_blocks >= 16 else 1
    blocks_per_slice = pl.cdiv(total_blocks, num_slices)
    need_mask = (num_slices * blocks_per_slice * tile_rows) != rows

    last_block = total_blocks - 1
    bps = blocks_per_slice

    def _in_index(s, i):
        # Clamp so a (rare) overhanging block re-reads the last valid block;
        # its contribution is zeroed by the in-kernel mask.
        return (jnp.minimum(s * bps + i, last_block), 0)

    in_spec = pl.BlockSpec((tile_rows, LANES), _in_index)

    kernel = functools.partial(
        _l1_sum_kernel,
        tile_rows=tile_rows,
        chunk_rows=chunk_rows,
        total_rows=rows,
        blocks_per_slice=blocks_per_slice,
        need_mask=need_mask,
    )

    partials = pl.pallas_call(
        kernel,
        out_shape=jax.ShapeDtypeStruct((num_slices, 1), jnp.float32),
        grid_spec=pltpu.PrefetchScalarGridSpec(
            num_scalar_prefetch=0,
            grid=(num_slices, blocks_per_slice),
            in_specs=[in_spec, in_spec],
            out_specs=pl.BlockSpec((1, 1), lambda s, i: (s, 0),
                                   memory_space=pltpu.SMEM),
            scratch_shapes=[pltpu.VMEM((SUBLANES, LANES), jnp.float32)],
        ),
        compiler_params=pltpu.CompilerParams(
            dimension_semantics=("parallel", "arbitrary"),
        ),
        cost_estimate=pl.CostEstimate(
            flops=2 * n_elem,
            transcendentals=0,
            bytes_accessed=2 * n_elem * itemsize + 4 * num_slices,
        ),
    )(x1m, x2m)

    total = jnp.sum(partials) + tail_sum
    return (total / jnp.float32(n_elem)).astype(jnp.float32)


if __name__ == "__main__":
    key = jax.random.PRNGKey(0)
    k1, k2 = jax.random.split(key)
    shape = (2, 4, 16, 16)
    x1 = jax.random.normal(k1, shape, dtype=jnp.float32)
    x2 = jax.random.normal(k2, shape, dtype=jnp.float32)

    out = color_loss(x1, x2)
    out = jax.block_until_ready(out)

    ref = jnp.mean(jnp.abs(x1 - x2))
    assert jnp.allclose(out, ref, rtol=1e-6, atol=1e-6), (out, ref)
    print("KERNEL_OK")
</pallas_src>

<mosaic_0001>
module attributes {stable_mosaic.version = 11 : i64} {
  func.func @_l1_sum_kernel(%arg0: i32, %arg1: i32, %arg2: memref<16x128xf32, #tpu.memory_space<vmem>>, %arg3: memref<16x128xf32, #tpu.memory_space<vmem>>, %arg4: memref<1x1xf32, #tpu.memory_space<smem>>, %arg5: memref<8x128xf32, #tpu.memory_space<vmem>>) attributes {dimension_semantics = [#tpu.dimension_semantics<parallel>, #tpu.dimension_semantics<arbitrary>], iteration_bounds = array<i64: 1, 1>, scalar_prefetch = 0 : i64, scratch_operands = 1 : i64, tpu.core_type = #tpu.core_type<tc>, window_params = [{transform_indices = @transform_0, window_bounds = array<i64: 16, 128>}, {transform_indices = @transform_1, window_bounds = array<i64: 16, 128>}, {transform_indices = @transform_2, window_bounds = array<i64: 1, 1>}]} {
    %c0_i32 = arith.constant 0 : i32
    %0 = arith.cmpi eq, %arg1, %c0_i32 : i32
    %1 = arith.extui %0 : i1 to i32
    %c0_i32_0 = arith.constant 0 : i32
    %2 = arith.cmpi ne, %1, %c0_i32_0 : i32
    scf.if %2 {
      %cst_10 = arith.constant 0.000000e+00 : f32
      %21 = vector.broadcast %cst_10 : f32 to vector<8x128xf32>
      %c0_11 = arith.constant 0 : index
      %c0_12 = arith.constant 0 : index
      %22 = vector.load %arg5[%c0_11, %c0_12] : memref<8x128xf32, #tpu.memory_space<vmem>>, vector<8x128xf32>
      tpu.vector_store %arg5[%c0_11, %c0_12], %21 {strides = array<i32>} : memref<8x128xf32, #tpu.memory_space<vmem>>, vector<8x128xf32>,
    } else {
    }
    %c0 = arith.constant 0 : index
    %c0_1 = arith.constant 0 : index
    %3 = vector.load %arg5[%c0, %c0_1] : memref<8x128xf32, #tpu.memory_space<vmem>>, vector<8x128xf32>
    %cst = arith.constant 0.000000e+00 : f32
    %4 = vector.broadcast %cst : f32 to vector<8x128xf32>
    %c0_i32_2 = arith.constant 0 : i32
    %c16_i32 = arith.constant 16 : i32
    %5 = arith.muli %c0_i32_2, %c16_i32 : i32
    %6 = tpu.assume_multiple %5, 16 : i32
    %7 = arith.index_cast %6 : i32 to index
    %c0_3 = arith.constant 0 : index
    %8 = vector.load %arg2[%7, %c0_3] : memref<16x128xf32, #tpu.memory_space<vmem>>, vector<16x128xf32>
    %9 = arith.index_cast %6 : i32 to index
    %c0_4 = arith.constant 0 : index
    %10 = vector.load %arg3[%9, %c0_4] : memref<16x128xf32, #tpu.memory_space<vmem>>, vector<16x128xf32>
    %11 = arith.subf %8, %10 : vector<16x128xf32>
    %12 = math.absf %11 : vector<16x128xf32>
    %13 = vector.shape_cast %12 : vector<16x128xf32> to vector<2x8x128xf32>
    %cst_5 = arith.constant dense<0.000000e+00> : vector<8x128xf32>
    %14 = vector.multi_reduction <add>, %13, %cst_5 [0] : vector<2x8x128xf32> to vector<8x128xf32>
    %15 = arith.addf %4, %14 : vector<8x128xf32>
    %c1_i32 = arith.constant 1 : i32
    %16 = arith.addf %3, %15 : vector<8x128xf32>
    %c0_6 = arith.constant 0 : index
    %c0_7 = arith.constant 0 : index
    %17 = vector.load %arg5[%c0_6, %c0_7] : memref<8x128xf32, #tpu.memory_space<vmem>>, vector<8x128xf32>
    tpu.vector_store %arg5[%c0_6, %c0_7], %16 {strides = array<i32>} : memref<8x128xf32, #tpu.memory_space<vmem>>, vector<8x128xf32>,
    %c0_i32_8 = arith.constant 0 : i32
    %18 = arith.cmpi eq, %arg1, %c0_i32_8 : i32
    %19 = arith.extui %18 : i1 to i32
    %c0_i32_9 = arith.constant 0 : i32
    %20 = arith.cmpi ne, %19, %c0_i32_9 : i32
    scf.if %20 {
      %c0_10 = arith.constant 0 : index
      %c0_11 = arith.constant 0 : index
      %21 = vector.load %arg5[%c0_10, %c0_11] : memref<8x128xf32, #tpu.memory_space<vmem>>, vector<8x128xf32>
      %22 = vector.shape_cast %21 : vector<8x128xf32> to vector<1x8x128xf32>
      %cst_12 = arith.constant dense<0.000000e+00> : vector<1xf32>
      %23 = vector.multi_reduction <add>, %22, %cst_12 [1, 2] : vector<1x8x128xf32> to vector<1xf32>
      %24 = vector.shape_cast %23 : vector<1xf32> to vector<1x1x1xf32>
      %25 = vector.extract %24[0, 0, 0] : f32 from vector<1x1x1xf32>
      %c0_13 = arith.constant 0 : index
      %c0_14 = arith.constant 0 : index
      %26 = memref.load %arg4[%c0_13, %c0_14] : memref<1x1xf32, #tpu.memory_space<smem>>
      memref.store %25, %arg4[%c0_13, %c0_14] : memref<1x1xf32, #tpu.memory_space<smem>>
    } else {
    }
    return
  }
  func.func @transform_0(%arg0: i32, %arg1: i32) -> (i32, i32) {
    %c1_i32 = arith.constant 1 : i32
    %0 = arith.muli %arg0, %c1_i32 : i32
    %1 = arith.addi %0, %arg1 : i32
    %c0_i32 = arith.constant 0 : i32
    %2 = arith.minsi %1, %c0_i32 : i32
    %c0_i32_0 = arith.constant 0 : i32
    %c0_i32_1 = arith.constant 0 : i32
    return %2, %c0_i32_0 : i32, i32
  }
  func.func @transform_1(%arg0: i32, %arg1: i32) -> (i32, i32) {
    %c1_i32 = arith.constant 1 : i32
    %0 = arith.muli %arg0, %c1_i32 : i32
    %1 = arith.addi %0, %arg1 : i32
    %c0_i32 = arith.constant 0 : i32
    %2 = arith.minsi %1, %c0_i32 : i32
    %c0_i32_0 = arith.constant 0 : i32
    %c0_i32_1 = arith.constant 0 : i32
    return %2, %c0_i32_0 : i32, i32
  }
  func.func @transform_2(%arg0: i32, %arg1: i32) -> (i32, i32) {
    %c0_i32 = arith.constant 0 : i32
    %c0_i32_0 = arith.constant 0 : i32
    return %arg0, %c0_i32 : i32, i32
  }
}

</mosaic_0001>

<bundles_post_ra>
// kernel: tpu_custom_call.1
= control target key start
LH: loop header
LB: loop body
LE: loop exit
PB: predicated region body
PF: predicated region fallthrough
CT: control target
= control target key end

     0   :  { %7 = vsyncpa [#allocation4], 0  ;;  %s220_s0 = inlined_call_operand.hbm [shape: f32[16,128], index: 0, kind: input, shape index: {}]   ;;  %s221_s1 = inlined_call_operand.hbm [shape: f32[16,128], index: 1, kind: input, shape index: {}]   ;;  %s222_s2 = inlined_call_operand.hbm [shape: f32[1,1], index: 2, kind: output, shape index: {}]  }
   0x1   :  { %8 = vsyncpa [#allocation7], 0 }
   0x2   :  { %9 = vsyncpa [#allocation5], 0  ;;  %s20_s11 = sshll.u32 %s220_s0, 4  ;;  %s191_s12 = smov [#allocation3]   ;;  %s21_s11 = int_to_ptr.hbm [resolvable:$true] %s20_s11 }
   0x3   :  { %s22_s13 = sshll.u32 %s191_s12, 4  ;;  %s39_s16 = sshll.u32 %s221_s1, 4  ;;  %s23_s13 = int_to_ptr.vmem [resolvable:$true] %s22_s13  ;;  %s40_s16 = int_to_ptr.hbm [resolvable:$true] %s39_s16 }
   0x4   :  { %s192_s17 = smov 128   ;;  %s193_s18 = smov 8  }
   0x5   :  { %28 = dma.hbm_to_vmem [thread:$0]  %s21_s11, 256, %s23_s13, [#allocation4], %s192_s17, %s192_s17, %s193_s18  }
   0x6   :  { %s194_s19 = smov [#allocation6]  }
   0x7   :  { %s41_s20 = sshll.u32 %s194_s19, 4  ;;  %s42_s20 = int_to_ptr.vmem [resolvable:$true] %s41_s20 }
   0x8   :  { %47 = dma.hbm_to_vmem [thread:$0]  %s40_s16, 256, %s42_s20, [#allocation7], %s192_s17, %s192_s17, %s193_s18  }
   0x9   :  { %185 = dma.done.wait [#allocation4], 256  }
   0xa   :  { %186 = vsyncadd [#allocation4], 4294967040 }
   0xb   :  { %187 = dma.done.wait [#allocation7], 256  }
   0xc   :  { %188 = vsyncadd [#allocation7], 4294967040  ;;  %v70_v0 = vld [vmem:[#allocation3] sm:$0xff]  ;;  %v71_v1 = vld [vmem:[#allocation3 + $0x8] sm:$0xff]  ;;  %s102_s21 = sshll.u32 %s222_s2, 4  ;;  %s195_s23 = smov [#allocation8]   ;;  %s103_s21 = int_to_ptr.hbm [resolvable:$true] %s102_s21 }
   0xd   :  { %v72_v2 = vld [vmem:[#allocation6] sm:$0xff]  ;;  %v73_v3 = vld [vmem:[#allocation6 + $0x8] sm:$0xff] }
   0xe   :  { %v74_v4 = vsub.f32 %v70_v0, %v72_v2  ;;  %v75_v5 = vsub.f32 %v71_v1, %v73_v3 }
  0x10   :  { %v76_v6 = vand.u32 2147483647, %v74_v4  ;;  %v77_v7 = vand.u32 2147483647, %v75_v5 }
  0x12   :  { %v78_v8 = vadd.f32 %v77_v7, %v76_v6 }
  0x14   :  { %86 = vadd.xlane.f32.xlu0 %v78_v8 }
  0x87   :  { %v87_v9 = vpop.xlane.xlu0 %86 }
  0x88   :  { %v88_v10 = vrot.slane %v87_v9, 4 }
  0x8a   :  { %v89_v11 = vadd.f32 %v88_v10, %v87_v9 }
  0x8c   :  { %v90_v12 = vrot.slane %v89_v11, 2 }
  0x8e   :  { %v91_v13 = vadd.f32 %v90_v12, %v89_v11 }
  0x90   :  { %v92_v14 = vrot.slane %v91_v13, 1 }
  0x92   :  { %v93_v15 = vadd.f32 %v92_v14, %v91_v13 }
  0x94   :  { %118 = vpush %v93_v15 }
  0xc5   :  { %s119_s22 = spop %118 }
  0xc6   :  { %96 = sst [smem:[#allocation8]] %s119_s22 }
  0xc7   :  { %105 = dma.smem_to_hbm %s195_s23, 16, %s103_s21, [#allocation5]  }
  0xc8   :  { %189 = dma.done.wait [#allocation5], 16  }
  0xc9   :  { %190 = vsyncadd [#allocation5], 4294967280 }
  0xca   :  { %110 = sfence }
  0xcb   :  { %111 = vsyncpa [#allocation4], 1 }
  0xcc   :  { %112 = vsyncpa [#allocation7], 1 }
  0xcd   :  { %113 = vsyncpa [#allocation5], 1 }

</bundles_post_ra>
